<compile_context>
chip_gen: v7x
topology: tpu7x:2x2x1
jax: 0.10.0
libtpu: 0.0.40
codegen_flags: <defaults>
</compile_context>

<pallas_src>
import jax
import jax.numpy as jnp
from jax.experimental import pallas as pl
from jax.experimental.pallas import tpu as pltpu

_LANE = 128
_SUBLANE = 8


def _round_up(x, m):
    return ((x + m - 1) // m) * m


def _pad2d(a, rows, cols):
    return jnp.pad(a, ((0, rows - a.shape[0]), (0, cols - a.shape[1])))


def _vmem_limit(bytes_needed):
    # The default scoped-VMEM limit (16 MiB v5e / 32 MiB v6e-v7x) is too small
    # for large batch tiles + a resident weight.  Cap at 56 MiB so the limit
    # always stays inside v7x's 64 MiB physical VMEM (v5e/v6e have 128 MiB).
    return int(min(max(bytes_needed + (4 << 20), 16 << 20), 56 << 20))


# ---------------------------------------------------------------------------
# Kernels
# ---------------------------------------------------------------------------
def _linear_kernel(x_ref, w_ref, b_ref, o_ref):
    # (tm, fin_pad) @ (fin_pad, fout_pad) on the MXU, native dtype in, f32 acc.
    acc = jnp.dot(x_ref[...], w_ref[...], preferred_element_type=jnp.float32)
    o_ref[...] = (acc + b_ref[...]).astype(o_ref.dtype)


def _bn_stats_kernel(x_ref, sum_ref, sumsq_ref):
    # Per-feature sum / sum-of-squares, accumulated across batch tiles in the
    # resident f32 output blocks (reduction grid axis, constant index_map).
    @pl.when(pl.program_id(0) == 0)
    def _init():
        sum_ref[...] = jnp.zeros_like(sum_ref)
        sumsq_ref[...] = jnp.zeros_like(sumsq_ref)

    xf = x_ref[...].astype(jnp.float32)     # one tile only — never the whole batch
    sum_ref[...] += jnp.sum(xf, axis=0, keepdims=True)
    sumsq_ref[...] += jnp.sum(xf * xf, axis=0, keepdims=True)


# ---------------------------------------------------------------------------
# pallas_call wrappers
# ---------------------------------------------------------------------------
def _pallas_linear(x_p, w_p, b_p, tm, out_dtype):
    n_pad, fin_pad = x_p.shape
    fout_pad = w_p.shape[1]
    need = 2 * (tm * fin_pad * x_p.dtype.itemsize
                + fin_pad * fout_pad * w_p.dtype.itemsize
                + fout_pad * 4
                + tm * fout_pad * jnp.dtype(out_dtype).itemsize)
    return pl.pallas_call(
        _linear_kernel,
        out_shape=jax.ShapeDtypeStruct((n_pad, fout_pad), out_dtype),
        grid_spec=pltpu.PrefetchScalarGridSpec(
            num_scalar_prefetch=0,
            grid=(n_pad // tm,),
            in_specs=[
                pl.BlockSpec((tm, fin_pad), lambda i: (i, 0)),        # x tile
                pl.BlockSpec((fin_pad, fout_pad), lambda i: (0, 0)),  # resident W
                pl.BlockSpec((1, fout_pad), lambda i: (0, 0)),        # resident bias
            ],
            out_specs=pl.BlockSpec((tm, fout_pad), lambda i: (i, 0)),
        ),
        compiler_params=pltpu.CompilerParams(
            # Independent batch tiles -> shard across v7x's 2 TensorCores.
            dimension_semantics=("parallel",),
            vmem_limit_bytes=_vmem_limit(need)),
    )(x_p, w_p, b_p)


def _pallas_bn_stats(x_p, tm):
    n_pad, fin_pad = x_p.shape
    need = 2 * (tm * fin_pad * x_p.dtype.itemsize + 2 * fin_pad * 4)
    return pl.pallas_call(
        _bn_stats_kernel,
        out_shape=(jax.ShapeDtypeStruct((1, fin_pad), jnp.float32),
                   jax.ShapeDtypeStruct((1, fin_pad), jnp.float32)),
        grid_spec=pltpu.PrefetchScalarGridSpec(
            num_scalar_prefetch=0,
            grid=(n_pad // tm,),
            in_specs=[pl.BlockSpec((tm, fin_pad), lambda i: (i, 0))],
            out_specs=[pl.BlockSpec((1, fin_pad), lambda i: (0, 0)),
                       pl.BlockSpec((1, fin_pad), lambda i: (0, 0))],
        ),
        compiler_params=pltpu.CompilerParams(
            dimension_semantics=("arbitrary",),   # reduction axis (accumulators)
            vmem_limit_bytes=_vmem_limit(need)),
    )(x_p)


# ---------------------------------------------------------------------------
# Host-side wrapper (tile selection, padding, BN folding)
# ---------------------------------------------------------------------------
def _pick_batch_tile(n, fin_pad, itemsize, batch_tile):
    if batch_tile is not None:
        assert batch_tile % _SUBLANE == 0, "batch_tile must be a multiple of 8"
        return batch_tile
    # Target ~1 MiB of x per grid step (per-step overhead ~0.35 us) in
    # multiples of 256 (MXU-friendly on v6e/v7x), capped at 1024 rows.
    tm = ((1 << 20) // max(fin_pad * itemsize, 1)) // 256 * 256
    tm = max(256, min(1024, tm))
    if n <= 256:
        return _round_up(n, _SUBLANE)        # tiny batch: one block
    if n < 2 * tm:
        # Prefer >=2 grid steps so the "parallel" axis shards across 2 TCs.
        return _round_up((n + 1) // 2, 256)
    return tm


def _reference(x, weight, bias, gamma=None, beta=None, *,
               use_batch_norm=False, eps=1e-5):
    h = x.astype(jnp.float32)
    if use_batch_norm:
        mean = jnp.mean(h, axis=0, keepdims=True)
        var = jnp.mean((h - mean) ** 2, axis=0, keepdims=True)
        h = (h - mean) * jax.lax.rsqrt(var + eps) * gamma[None, :].astype(
            jnp.float32) + beta[None, :].astype(jnp.float32)
    return h @ weight.T.astype(jnp.float32) + bias[None, :].astype(jnp.float32)


def basic_block_forward(x, weight, bias, gamma=None, beta=None, *,
                        use_batch_norm=False, eps=1e-5, batch_tile=None,
                        small_problem_xla_fallback=False):
    """_BasicBlock forward.  x: (N, fin); weight: (fout, fin); bias: (fout,)."""
    n, fin = x.shape
    fout, fin_w = weight.shape
    assert fin_w == fin, "weight must be (out_features, in_features)"
    if use_batch_norm:
        assert gamma is not None and beta is not None

    # Escape hatch: at tiny sizes the kernel is pure launch/DMA/step overhead
    # (MXU <2% utilized); let XLA fuse it.  Off by default so the Pallas path
    # is exercised by this script.
    if small_problem_xla_fallback and n * fin * fout < (1 << 19):
        return _reference(x, weight, bias, gamma, beta,
                          use_batch_norm=use_batch_norm, eps=eps).astype(x.dtype)

    fin_pad = _round_up(fin, _LANE)
    fout_pad = _round_up(fout, _LANE)
    tm = _pick_batch_tile(n, fin_pad, x.dtype.itemsize, batch_tile)
    n_pad = _round_up(n, tm)

    # Wrapper-side layout plumbing (one-time per call, not per grid step):
    # zero-pad to lane-dense shapes, transpose W once to (fin, fout).
    x_p = _pad2d(x, n_pad, fin_pad)
    w_t = _pad2d(weight.T, fin_pad, fout_pad)                    # (fin_pad, fout_pad)
    b_p = jnp.pad(bias.astype(jnp.float32),
                  (0, fout_pad - fout)).reshape(1, fout_pad)

    if use_batch_norm:
        # Pass 1: per-feature batch statistics (tiled Pallas reduction).
        s, sq = _pallas_bn_stats(x_p, tm)
        mean = s / n                                  # zero-padded rows add 0
        var = jnp.maximum(sq / n - mean * mean, 0.0)  # biased (training) variance
        g = jnp.pad(gamma.astype(jnp.float32),
                    (0, fin_pad - fin)).reshape(1, fin_pad)
        be = jnp.pad(beta.astype(jnp.float32),
                     (0, fin_pad - fin)).reshape(1, fin_pad)
        a = g * jax.lax.rsqrt(var + eps)              # (1, fin_pad)
        c = be - mean * a                             # (1, fin_pad)
        # Fold BN into the linear layer so pass 2 is identical to the non-BN
        # path:  BN(x) @ W.T + b == x @ (W.T * a) + (b + c @ W.T)
        w_t32 = w_t.astype(jnp.float32)
        w_pallas = (w_t32 * a.reshape(fin_pad, 1)).astype(x.dtype)
        b_pallas = b_p + c @ w_t32                    # (1, fout_pad), f32
    else:
        w_pallas = w_t.astype(x.dtype)
        b_pallas = b_p

    # Pass 2: batch-tiled matmul + bias with resident W / bias.
    out_p = _pallas_linear(x_p, w_pallas, b_pallas, tm, x.dtype)
    return out_p[:n, :fout]


# ---------------------------------------------------------------------------
# Demo / self-test
# ---------------------------------------------------------------------------
if __name__ == "__main__":
    # Shapes consistent with the module: batch=8, input_size=32, output_size=64.
    N, IN, OUT = 8, 32, 64

    key = jax.random.PRNGKey(0)
    kx, kw, kb, kg, kbe, kx2 = jax.random.split(key, 6)

    x = jax.random.normal(kx, (N, IN), dtype=jnp.float32)
    bound = 1.0 / (IN ** 0.5)                  # PyTorch Linear init bound
    weight = jax.random.uniform(kw, (OUT, IN), jnp.float32, -bound, bound)
    bias = jax.random.uniform(kb, (OUT,), jnp.float32, -bound, bound)
    # nn.BatchNorm1d default init is gamma=1, beta=0; use non-trivial values to
    # exercise the affine fold.
    gamma = jax.random.uniform(kg, (IN,), jnp.float32, 0.5, 1.5)
    beta = jax.random.normal(kbe, (IN,), jnp.float32) * 0.1

    # 1) use_batch_norm=False (Identity norm).
    out_id = basic_block_forward(x, weight, bias, use_batch_norm=False)
    jax.block_until_ready(out_id)
    ref_id = _reference(x, weight, bias, use_batch_norm=False)
    assert jnp.allclose(out_id, ref_id, atol=1e-4, rtol=1e-4)

    # 2) use_batch_norm=True (training-mode batch stats, folded into the linear).
    out_bn = basic_block_forward(x, weight, bias, gamma, beta,
                                 use_batch_norm=True)
    jax.block_until_ready(out_bn)
    ref_bn = _reference(x, weight, bias, gamma, beta, use_batch_norm=True)
    assert jnp.allclose(out_bn, ref_bn, atol=1e-3, rtol=1e-3)

    # 3) Larger ragged bf16 batch -> zero-padded, batch-tiled over a 2-step
    #    "parallel" grid, resident bf16 weight, f32 accumulation.
    N2 = 1000
    x2 = jax.random.normal(kx2, (N2, IN), jnp.float32).astype(jnp.bfloat16)
    w_bf, b_bf = weight.astype(jnp.bfloat16), bias.astype(jnp.bfloat16)
    out2 = basic_block_forward(x2, w_bf, b_bf, use_batch_norm=False)
    jax.block_until_ready(out2)
    ref2 = _reference(x2, w_bf, b_bf, use_batch_norm=False)
    assert jnp.allclose(out2.astype(jnp.float32), ref2, atol=2e-2, rtol=2e-2)

    # 4) bf16 + BatchNorm (previously untested combination; loose tolerance
    #    since the folded weight is re-quantized to bf16 before the MXU).
    out2_bn = basic_block_forward(x2, w_bf, b_bf, gamma, beta,
                                  use_batch_norm=True)
    jax.block_until_ready(out2_bn)
    ref2_bn = _reference(x2, w_bf, b_bf, gamma, beta, use_batch_norm=True)
    assert jnp.allclose(out2_bn.astype(jnp.float32), ref2_bn,
                        atol=5e-2, rtol=5e-2)

    # 5) Tiny-problem XLA fallback path (optional escape hatch).
    out_small = basic_block_forward(x, weight, bias, use_batch_norm=False,
                                    small_problem_xla_fallback=True)
    jax.block_until_ready(out_small)
    assert jnp.allclose(out_small, ref_id, atol=1e-4, rtol=1e-4)

    print("KERNEL_OK")
</pallas_src>

<mosaic_0001>
module attributes {stable_mosaic.version = 11 : i64} {
  func.func @_linear_kernel(%arg0: i32, %arg1: memref<8x128xf32, #tpu.memory_space<vmem>>, %arg2: memref<128x128xf32, #tpu.memory_space<vmem>>, %arg3: memref<1x128xf32, #tpu.memory_space<vmem>>, %arg4: memref<8x128xf32, #tpu.memory_space<vmem>>) attributes {dimension_semantics = [#tpu.dimension_semantics<parallel>], iteration_bounds = array<i64: 1>, scalar_prefetch = 0 : i64, scratch_operands = 0 : i64, tpu.core_type = #tpu.core_type<tc>, window_params = [{transform_indices = @transform_0, window_bounds = array<i64: 8, 128>}, {pipeline_mode = #tpu.pipeline_mode<synchronous>, transform_indices = @transform_1, window_bounds = array<i64: 128, 128>}, {pipeline_mode = #tpu.pipeline_mode<synchronous>, transform_indices = @transform_2, window_bounds = array<i64: 1, 128>}, {transform_indices = @transform_3, window_bounds = array<i64: 8, 128>}]} {
    %c0 = arith.constant 0 : index
    %c0_0 = arith.constant 0 : index
    %0 = vector.load %arg1[%c0, %c0_0] : memref<8x128xf32, #tpu.memory_space<vmem>>, vector<8x128xf32>
    %c0_1 = arith.constant 0 : index
    %c0_2 = arith.constant 0 : index
    %1 = vector.load %arg2[%c0_1, %c0_2] : memref<128x128xf32, #tpu.memory_space<vmem>>, vector<128x128xf32>
    %cst = arith.constant dense<0.000000e+00> : vector<8x128xf32>
    %2 = tpu.matmul %0, %1, %cst {dimension_numbers = #tpu.dot_dimension_numbers<[1], [0], [0], [1], [0, 0, 1, 1], [], []>} : vector<8x128xf32>, vector<128x128xf32>, vector<8x128xf32> -> vector<8x128xf32>
    %c0_3 = arith.constant 0 : index
    %c0_4 = arith.constant 0 : index
    %3 = vector.load %arg3[%c0_3, %c0_4] : memref<1x128xf32, #tpu.memory_space<vmem>>, vector<1x128xf32>
    %4 = vector.broadcast %3 : vector<1x128xf32> to vector<8x128xf32>
    %5 = arith.addf %2, %4 : vector<8x128xf32>
    %c0_5 = arith.constant 0 : index
    %c0_6 = arith.constant 0 : index
    %6 = vector.load %arg4[%c0_5, %c0_6] : memref<8x128xf32, #tpu.memory_space<vmem>>, vector<8x128xf32>
    tpu.vector_store %arg4[%c0_5, %c0_6], %5 {strides = array<i32>} : memref<8x128xf32, #tpu.memory_space<vmem>>, vector<8x128xf32>,
    return
  }
  func.func @transform_0(%arg0: i32) -> (i32, i32) {
    %c0_i32 = arith.constant 0 : i32
    %c0_i32_0 = arith.constant 0 : i32
    return %arg0, %c0_i32 : i32, i32
  }
  func.func @transform_1(%arg0: i32) -> (i32, i32) {
    %c0_i32 = arith.constant 0 : i32
    %c0_i32_0 = arith.constant 0 : i32
    %c0_i32_1 = arith.constant 0 : i32
    return %c0_i32, %c0_i32_0 : i32, i32
  }
  func.func @transform_2(%arg0: i32) -> (i32, i32) {
    %c0_i32 = arith.constant 0 : i32
    %c0_i32_0 = arith.constant 0 : i32
    %c0_i32_1 = arith.constant 0 : i32
    return %c0_i32, %c0_i32_0 : i32, i32
  }
  func.func @transform_3(%arg0: i32) -> (i32, i32) {
    %c0_i32 = arith.constant 0 : i32
    %c0_i32_0 = arith.constant 0 : i32
    return %arg0, %c0_i32 : i32, i32
  }
}

</mosaic_0001>

<bundles_post_ra>
// kernel: tpu_custom_call.1
= control target key start
LH: loop header
LB: loop body
LE: loop exit
PB: predicated region body
PF: predicated region fallthrough
CT: control target
= control target key end

     0   :  { %8 = vsyncpa [#allocation3], 0  ;;  %s383_s0 = inlined_call_operand.hbm [shape: f32[8,128], index: 0, kind: input, shape index: {}]   ;;  %s384_s1 = inlined_call_operand.hbm [shape: f32[128,128], index: 1, kind: input, shape index: {}]   ;;  %s385_s2 = inlined_call_operand.vmem [shape: f32[1,128], index: 2, kind: input, shape index: {}]   ;;  %s386_s3 = inlined_call_operand.hbm [shape: f32[8,128], index: 3, kind: output, shape index: {}]  }
   0x1   :  { %9 = vsyncpa [#allocation6], 0 }
   0x2   :  { %10 = vsyncpa [#allocation4], 0  ;;  %s309_s12 = smov [#allocation2]   ;;  %s310_s14 = smov [#allocation5]  }
   0x3   :  { %s17_s13 = sshll.u32 %s309_s12, 4  ;;  %s26_s15 = sshll.u32 %s310_s14, 4  ;;  %s18_s13 = int_to_ptr.vmem [resolvable:$true] %s17_s13  ;;  %s337_s15 = int_to_ptr.vmem [resolvable:$true] %s26_s15 }
   0x4   :  { %s237_s18 = scalar_lea.hbm %s383_s0, 128 }
   0x5   :  { %p238_p0 = scmp.ne.s32.totalorder %s383_s0, %s237_s18  ;;  %p241_p1 = scmp.lt.u32.totalorder %s237_s18, %s383_s0 }
   0x7   :  { %p243_p2 = pnand %p241_p1, %p238_p0 }
   0x9   :  { %246 = shalt.err (!%p243_p2)
}
   0xa   :  { %s247_s23 = scalar_lea.vmem %s18_s13, 128  ;;  %p252_p4 = scmp.lt.s32.totalorder %s18_s13, %s18_s13 }
   0xb   :  { %p248_p3 = scmp.ne.s32.totalorder %s18_s13, %s247_s23  ;;  %p253_p5 = scmp.lt.s32.totalorder %s247_s23, %s247_s23 }
   0xd   :  { %p254_p6 = por %p253_p5, %p252_p4 }
   0xf   :  { %p255_p7 = pnand %p254_p6, %p248_p3 }
  0x11   :  { %258 = shalt.err (!%p255_p7)
}
  0x12   :  { %20 = dma.hbm_to_vmem [thread:$0]  %s383_s0, 128, %s18_s13, [#allocation3]  }
  0x13   :  { %s259_s28 = scalar_lea.hbm %s384_s1, 2048 }
  0x14   :  { %p260_p8 = scmp.ne.s32.totalorder %s384_s1, %s259_s28  ;;  %p263_p9 = scmp.lt.u32.totalorder %s259_s28, %s384_s1 }
  0x16   :  { %p265_p10 = pnand %p263_p9, %p260_p8 }
  0x18   :  { %268 = shalt.err (!%p265_p10)
}
  0x19   :  { %s269_s6 = scalar_lea.vmem %s337_s15, 2048  ;;  %p274_p12 = scmp.lt.s32.totalorder %s337_s15, %s337_s15 }
  0x1a   :  { %p270_p11 = scmp.ne.s32.totalorder %s337_s15, %s269_s6  ;;  %p275_p13 = scmp.lt.s32.totalorder %s269_s6, %s269_s6 }
  0x1c   :  { %p276_p0 = por %p275_p13, %p274_p12 }
  0x1e   :  { %p277_p1 = pnand %p276_p0, %p270_p11 }
  0x20   :  { %280 = shalt.err (!%p277_p1)
}
  0x21   :  { %s311_s0 = smov 128   ;;  %s312_s7 = smov 8  }
  0x22   :  { %32 = dma.hbm_to_vmem [thread:$0]  %s384_s1, 2048, %s337_s15, [#allocation6], %s311_s0, %s311_s0, %s312_s7  }
  0x23   :  { %303 = dma.done.wait [#allocation3], 128  }
  0x24   :  { %304 = vsyncadd [#allocation3], 4294967168 }
  0x25   :  { %305 = dma.done.wait [#allocation6], 2048  }
  0x26   :  { %306 = vsyncadd [#allocation6], 4294965248  ;;  %v313_v0 = vmov 0.0|0.0   ;;  %vm314_vm0 = vmmov 0   ;;  %v315_v1 = vmov 0.0   ;;  %v42_v2 = vld [vmem:[#allocation5] sm:$0xff] }
  0x27   :  { %205 = vmatprep.subr.bf16.mxu0 %v313_v0  ;;  %202 = vmatprep.mubr.msk.f32.mxu0 %vm314_vm0, %v315_v1  ;;  %v43_v3 = vld [vmem:[#allocation5 + $0x8] sm:$0xff]  ;;  %v44_v4 = vld [vmem:[#allocation5 + $0x10] sm:$0xff]  ;;  %v45_v6 = vld [vmem:[#allocation5 + $0x18] sm:$0xff]  ;;  %s316_s11 = smov [#allocation7]  }
  0x28   :  { %v206_v5 = vpack.c.bf16 %v43_v3, %v42_v2  ;;  %v209_v7 = vpack.c.bf16 %v45_v6, %v44_v4  ;;  %v46_v8 = vld [vmem:[#allocation5 + $0x20] sm:$0xff]  ;;  %v47_v9 = vld [vmem:[#allocation5 + $0x28] sm:$0xff]  ;;  %v48_v11 = vld [vmem:[#allocation5 + $0x30] sm:$0xff]  ;;  %s142_s12 = sshll.u32 %s316_s11, 4  ;;  %s143_s12 = int_to_ptr.vmem [resolvable:$true] %s142_s12 }
  0x29   :  { %v212_v10 = vpack.c.bf16 %v47_v9, %v46_v8  ;;  %v49_v12 = vld [vmem:[#allocation5 + $0x38] sm:$0xff]  ;;  %v50_v14 = vld [vmem:[#allocation5 + $0x40] sm:$0xff]  ;;  %v51_v15 = vld [vmem:[#allocation5 + $0x48] sm:$0xff]  ;;  %s281_s13 = scalar_lea.vmem %s143_s12, 128  ;;  %p286_p3 = scmp.lt.s32.totalorder %s143_s12, %s143_s12 }
  0x2a   :  { %207 = vmatpush3.bf16.msra.mxu0 %v206_v5  ;;  %v215_v13 = vpack.c.bf16 %v49_v12, %v48_v11  ;;  %v218_v16 = vpack.c.bf16 %v51_v15, %v50_v14  ;;  %v52_v17 = vld [vmem:[#allocation5 + $0x50] sm:$0xff]  ;;  %v53_v18 = vld [vmem:[#allocation5 + $0x58] sm:$0xff]  ;;  %v54_v20 = vld [vmem:[#allocation5 + $0x60] sm:$0xff]  ;;  %p282_p2 = scmp.ne.s32.totalorder %s143_s12, %s281_s13  ;;  %p287_p4 = scmp.lt.s32.totalorder %s281_s13, %s281_s13 }
  0x2b   :  { %208 = vmatprep.subr.bf16.mxu0 %v313_v0  ;;  %v221_v19 = vpack.c.bf16 %v53_v18, %v52_v17  ;;  %v55_v21 = vld [vmem:[#allocation5 + $0x68] sm:$0xff]  ;;  %v56_v23 = vld [vmem:[#allocation5 + $0x70] sm:$0xff]  ;;  %v57_v24 = vld [vmem:[#allocation5 + $0x78] sm:$0xff] }
  0x2c   :  { %v224_v22 = vpack.c.bf16 %v55_v21, %v54_v20  ;;  %v227_v25 = vpack.c.bf16 %v57_v24, %v56_v23  ;;  %v41_v26 = vld [vmem:[#allocation2] sm:$0xff]  ;;  %p288_p5 = por %p287_p4, %p286_p3 }
  0x2d   :  { %v152_v27 = vld [vmem:[%s385_s2] ss:$0 sm:$0xff] }
  0x2e   :  { %210 = vmatpush3.bf16.msra.mxu0 %v209_v7  ;;  %p289_p6 = pnand %p288_p5, %p282_p2 }
  0x2f   :  { %211 = vmatprep.subr.bf16.mxu0 %v313_v0 }
  0x32   :  { %213 = vmatpush3.bf16.msra.mxu0 %v212_v10 }
  0x33   :  { %214 = vmatprep.subr.bf16.mxu0 %v313_v0 }
  0x36   :  { %216 = vmatpush3.bf16.msra.mxu0 %v215_v13 }
  0x37   :  { %217 = vmatprep.subr.bf16.mxu0 %v313_v0 }
  0x3a   :  { %219 = vmatpush3.bf16.msra.mxu0 %v218_v16 }
  0x3b   :  { %220 = vmatprep.subr.bf16.mxu0 %v313_v0 }
  0x3e   :  { %222 = vmatpush3.bf16.msra.mxu0 %v221_v19 }
  0x3f   :  { %223 = vmatprep.subr.bf16.mxu0 %v313_v0 }
  0x42   :  { %225 = vmatpush3.bf16.msra.mxu0 %v224_v22 }
  0x43   :  { %226 = vmatprep.subr.bf16.mxu0 %v313_v0 }
  0x46   :  { %228 = vmatpush3.bf16.msra.mxu0 %v227_v25 }
  0x49   :  { %203 = vmatmul.mubr.f32.vlgmr.msra.gmra.mrb[0].mxu0 %v41_v26 }
 0x11c   :  { %v131_v28 = vpop.f32.mrb[0].mxu0 }
 0x11d   :  { %v132_v29 = vadd.f32 %v152_v27, %v131_v28  ;;  %v204_v30 = vpop.f32.mrb[1].mxu0 }
 0x11f   :  { %135 = vst [vmem:[#allocation7] sm:$0xff] %v132_v29 }
 0x120   :  { %292 = shalt.err (!%p289_p6)
}
 0x121   :  { %s293_s16 = scalar_lea.hbm %s386_s3, 128 }
 0x122   :  { %p294_p7 = scmp.ne.s32.totalorder %s386_s3, %s293_s16  ;;  %p297_p8 = scmp.lt.u32.totalorder %s293_s16, %s386_s3 }
 0x124   :  { %p299_p9 = pnand %p297_p8, %p294_p7 }
 0x126   :  { %302 = shalt.err (!%p299_p9)
}
 0x127   :  { %145 = dma.vmem_to_hbm [thread:$0]  %s143_s12, 128, %s386_s3, [#allocation4]  }
 0x128   :  { %307 = dma.done.wait [#allocation4], 128  }
 0x129   :  { %308 = vsyncadd [#allocation4], 4294967168 }
 0x12a   :  { %149 = vsyncpa [#allocation3], 1 }
 0x12b   :  { %150 = vsyncpa [#allocation6], 1 }
 0x12c   :  { %151 = vsyncpa [#allocation4], 1 }

</bundles_post_ra>
